<compile_context>
chip_gen: v6e
topology: v6e:2x2x1
jax: 0.10.0
libtpu: 0.0.40
codegen_flags: <defaults>
</compile_context>

<pallas_src>
import jax
import jax.numpy as jnp
from jax.experimental import pallas as pl
from jax.experimental.pallas import tpu as pltpu

_SUBLANE = 8    # vreg sublane width (second-to-last dim, f32)
_LANE = 128     # vreg lane width (last dim)


def _round_up(x, m):
    return ((x + m - 1) // m) * m


def _pad2d(a, rows, cols):
    r, c = a.shape
    if r == rows and c == cols:
        return a
    return jnp.pad(a, ((0, rows - r), (0, cols - c)))


def node_predictor_kernel(x_ref, w1_ref, b1_ref, w2_ref, b2_ref, o_ref, acc_ref):
    """out = relu(x @ W1 + b1) @ W2 + b2 for one (row-tile, hidden-chunk) step.

    Grid axis 1 chunks the hidden axis (columns of W1 / rows of W2).  ReLU is
    elementwise over hidden units, so applying it per chunk is exact; each
    chunk's contribution to the second matmul accumulates into an f32 scratch.
    """
    k = pl.program_id(1)

    @pl.when(k == 0)
    def _():
        acc_ref[...] = jnp.zeros_like(acc_ref)

    # Native-dtype x tile; bf16 cast here (VPU) instead of a wrapper HBM pass.
    x = x_ref[...].astype(jnp.bfloat16)
    h = jnp.dot(x, w1_ref[...], preferred_element_type=jnp.float32)
    h = jnp.maximum(h + b1_ref[...], 0.0)                 # f32 bias + ReLU (VPU)
    acc_ref[...] += jnp.dot(h.astype(jnp.bfloat16), w2_ref[...],
                            preferred_element_type=jnp.float32)

    @pl.when(k == pl.num_programs(1) - 1)
    def _():
        o_ref[...] = (acc_ref[...] + b2_ref[...]).astype(o_ref.dtype)


def _chip_info():
    """(vmem_capacity_bytes, has_two_tensorcores) with conservative fallbacks."""
    kind = ""
    try:
        kind = jax.devices()[0].device_kind.lower()
    except Exception:
        pass
    is_v7 = "v7" in kind
    try:
        vmem = int(pltpu.get_tpu_info().vmem_capacity_bytes)
    except Exception:
        vmem = (64 << 20) if is_v7 else (128 << 20)
    return vmem, is_v7


def _choose_tiles(N, in_dim, out_dim, x_bytes, out_bytes, force_hidden_tile=None):
    """Pick (tile_n, tile_h, hid_p, num_k, single_buffer_weights, vmem_limit)."""
    vmem_cap, two_tc = _chip_info()
    small_vmem = vmem_cap <= (64 << 20)            # v7x: 64 MiB per TensorCore
    budget = (36 << 20) if small_vmem else (56 << 20)
    vmem_limit = (48 << 20) if small_vmem else (100 << 20)

    n8 = _round_up(max(N, 1), _SUBLANE)
    hid_full = _round_up(in_dim, _LANE)

    def footprint(tn, th, w_bufs):
        # x / out tiles are double-buffered by the pipeline.
        xio = 2 * tn * in_dim * x_bytes + 2 * tn * out_dim * out_bytes
        # bf16 weight chunk + f32 bias chunk, times pipeline buffer count.
        w = w_bufs * (in_dim * th * 2 + th * 4 + th * out_dim * 2) + out_dim * 4
        # f32 h, its bf16 copy, f32 accumulator scratch.
        tmp = tn * th * 4 + tn * th * 2 + tn * out_dim * 4
        return xio + w + tmp

    if force_hidden_tile is not None:
        tile_h = int(force_hidden_tile)
        assert tile_h % _LANE == 0, "hidden tile must be a multiple of 128"
        tile_h = min(tile_h, hid_full)
    else:
        tile_h = hid_full                          # fully fused if it fits
        if footprint(min(256, n8), tile_h, 1) > budget:
            # Stream hidden chunks: 512 fills the 256-wide v6e/v7x MXU and is a
            # multiple of 128 for v5e.
            tile_h = min(512, hid_full)
            while tile_h > _LANE and footprint(_SUBLANE, tile_h, 2) > budget:
                tile_h //= 2

    hid_p = _round_up(in_dim, tile_h)
    num_k = hid_p // tile_h
    single_buffer_weights = (num_k == 1)           # grid-invariant -> 1 buffer
    w_bufs = 1 if single_buffer_weights else 2

    # Largest row tile (multiple of 8, <= 1024) under the budget.
    tile_n = min(1024, n8)
    while tile_n > _SUBLANE and footprint(tile_n, tile_h, w_bufs) > budget:
        tile_n -= _SUBLANE

    # Split the row grid only where it pays: always on 2-TC parts (v7x), and on
    # 1-TC parts only when each half still has >= 256 rows (DMA/compute overlap).
    if (two_tc and n8 >= 2 * _SUBLANE) or n8 >= 512:
        half = _round_up(-(-n8 // 2), _SUBLANE)
        tile_n = max(_SUBLANE, min(tile_n, half))

    return tile_n, tile_h, hid_p, num_k, single_buffer_weights, vmem_limit


def node_predictor(node_embed, w1, b1, w2, b2, *, hidden_tile=None):
    """Pallas forward of NodePredictor: relu(x @ W1 + b1) @ W2 + b2.

    node_embed: [N, in_dim]; w1: [in_dim, in_dim]; b1: [in_dim];
    w2: [in_dim, out_dim]; b2: [out_dim].  w1/w2 are the nn.Linear weights
    pre-transposed to [in, out] layout.  `hidden_tile` (multiple of 128) forces
    the hidden-chunk width, mainly for testing the K-accumulation path.
    """
    N, in_dim = node_embed.shape
    out_dim = w2.shape[1]
    out_dtype = node_embed.dtype
    x_bytes = jnp.dtype(node_embed.dtype).itemsize
    out_bytes = jnp.dtype(out_dtype).itemsize

    (tile_n, tile_h, hid_p, num_k,
     single_buf_w, vmem_limit) = _choose_tiles(
        N, in_dim, out_dim, x_bytes, out_bytes, force_hidden_tile=hidden_tile)

    grid = (pl.cdiv(N, tile_n), num_k)

    # One-time pad/cast of the (small) parameters only; x is passed untouched.
    # Hidden-axis zero padding is exact: relu(x@0 + 0) = 0 and 0-rows of W2 add 0.
    w1_p = _pad2d(w1, in_dim, hid_p).astype(jnp.bfloat16)
    w2_p = _pad2d(w2, hid_p, out_dim).astype(jnp.bfloat16)
    b1_p = _pad2d(b1.reshape(1, -1).astype(jnp.float32), 1, hid_p)
    b2_p = b2.reshape(1, -1).astype(jnp.float32)

    def w_spec(shape, index_map):
        # Grid-invariant operands (num_k == 1) need only a single pipeline buffer;
        # hidden-chunked weights keep the default 2 buffers so chunk DMA overlaps.
        if single_buf_w:
            return pl.BlockSpec(shape, index_map, pipeline_mode=pl.Buffered(1))
        return pl.BlockSpec(shape, index_map)

    n_row_tiles = grid[0]
    weight_bytes = (w1_p.size * 2 + w2_p.size * 2 + b1_p.size * 4 + b2_p.size * 4)
    cost = pl.CostEstimate(
        flops=2 * N * in_dim * hid_p + 2 * N * hid_p * out_dim,
        transcendentals=0,
        bytes_accessed=(N * in_dim * x_bytes
                        + weight_bytes * (n_row_tiles if num_k > 1 else 1)
                        + N * out_dim * out_bytes),
    )

    out = pl.pallas_call(
        node_predictor_kernel,
        out_shape=jax.ShapeDtypeStruct((N, out_dim), out_dtype),
        grid_spec=pltpu.PrefetchScalarGridSpec(
            num_scalar_prefetch=0,
            grid=grid,
            in_specs=[
                # x row tile in native dtype; last dim == full in_dim so no
                # 128-padding is required.  Constant along k -> one DMA per row tile.
                pl.BlockSpec((tile_n, in_dim), lambda i, k: (i, 0)),
                w_spec((in_dim, tile_h), lambda i, k: (0, k)),      # W1 hidden chunk
                w_spec((1, tile_h), lambda i, k: (0, k)),           # b1 hidden chunk
                w_spec((tile_h, out_dim), lambda i, k: (k, 0)),     # W2 hidden chunk
                pl.BlockSpec((1, out_dim), lambda i, k: (0, 0),
                             pipeline_mode=pl.Buffered(1)),         # b2 (invariant)
            ],
            # Unpadded out_dim: masked store, but no 128/out_dim writeback
            # amplification and no wrapper column-slice pass.
            out_specs=pl.BlockSpec((tile_n, out_dim), lambda i, k: (i, 0)),
            scratch_shapes=[pltpu.VMEM((tile_n, out_dim), jnp.float32)],
        ),
        compiler_params=pltpu.CompilerParams(
            dimension_semantics=("parallel", "arbitrary"),
            vmem_limit_bytes=vmem_limit,
        ),
        cost_estimate=cost,
    )(node_embed, w1_p, b1_p, w2_p, b2_p)

    return out


def _reference_bf16(x, w1, b1, w2, b2):
    # Same numerics as the kernel: bf16 MXU operands, f32 accumulation.
    h = jnp.dot(x.astype(jnp.bfloat16), w1.astype(jnp.bfloat16),
                preferred_element_type=jnp.float32) + b1.reshape(1, -1)
    h = jnp.maximum(h, 0.0)
    y = jnp.dot(h.astype(jnp.bfloat16), w2.astype(jnp.bfloat16),
                preferred_element_type=jnp.float32) + b2.reshape(1, -1)
    return y.astype(x.dtype)


def _reference_f32(x, w1, b1, w2, b2):
    h = jnp.maximum(x @ w1 + b1.reshape(1, -1), 0.0)
    return h @ w2 + b2.reshape(1, -1)


def _run_case(key, N, in_dim, out_dim, hidden_tile=None):
    k_x, k_w1, k_b1, k_w2, k_b2 = jax.random.split(key, 5)
    x = jax.random.normal(k_x, (N, in_dim), dtype=jnp.float32)
    # nn.Linear weights, pre-transposed to [in, out]; deterministic synthetic init.
    w1_t = jax.random.normal(k_w1, (in_dim, in_dim), dtype=jnp.float32) * 0.1
    b1 = jax.random.normal(k_b1, (in_dim,), dtype=jnp.float32) * 0.1
    w2_t = jax.random.normal(k_w2, (in_dim, out_dim), dtype=jnp.float32) * 0.1
    b2 = jax.random.normal(k_b2, (out_dim,), dtype=jnp.float32) * 0.1

    out = jax.block_until_ready(
        node_predictor(x, w1_t, b1, w2_t, b2, hidden_tile=hidden_tile))
    assert out.shape == (N, out_dim)

    # Tight check against a reference with identical bf16-operand numerics.
    ref_bf16 = _reference_bf16(x, w1_t, b1, w2_t, b2)
    assert jnp.allclose(out, ref_bf16, atol=2e-4, rtol=2e-4), "bf16-path mismatch"

    # Loose check that module semantics (full f32 forward) are preserved.
    # TODO(synk): if downstream needs exact f32 numerics, add an f32-operand path
    # for small in_dim where the bf16 MXU gain is irrelevant.
    ref_f32 = _reference_f32(x, w1_t, b1, w2_t, b2)
    assert jnp.allclose(out, ref_f32, atol=5e-2, rtol=5e-2), "semantic mismatch"


if __name__ == "__main__":
    key = jax.random.PRNGKey(0)
    k0, k1, k2 = jax.random.split(key, 3)

    # Small shapes consistent with the module (launch-overhead regime).
    _run_case(k0, N=8, in_dim=32, out_dim=16)

    # Ragged N: partial last row tile is masked (no wrapper pad/slice); on v7x the
    # row grid splits 2-way across the TensorCores.
    _run_case(k1, N=272, in_dim=96, out_dim=24)

    # Forced 128-wide hidden chunks to exercise the K-accumulation path that
    # engages automatically for large in_dim (the v7x VMEM-overflow fix).
    _run_case(k2, N=64, in_dim=160, out_dim=24, hidden_tile=128)

    print("KERNEL_OK")
</pallas_src>

<mosaic_0001>
module attributes {stable_mosaic.version = 11 : i64} {
  func.func @node_predictor_kernel(%arg0: i32, %arg1: i32, %arg2: memref<8x32xf32, #tpu.memory_space<vmem>>, %arg3: memref<32x128xbf16, #tpu.memory_space<vmem>>, %arg4: memref<1x128xf32, #tpu.memory_space<vmem>>, %arg5: memref<128x16xbf16, #tpu.memory_space<vmem>>, %arg6: memref<1x16xf32, #tpu.memory_space<vmem>>, %arg7: memref<8x16xf32, #tpu.memory_space<vmem>>, %arg8: memref<8x16xf32, #tpu.memory_space<vmem>>) attributes {dimension_semantics = [#tpu.dimension_semantics<parallel>, #tpu.dimension_semantics<arbitrary>], iteration_bounds = array<i64: 1, 1>, scalar_prefetch = 0 : i64, scratch_operands = 1 : i64, tpu.core_type = #tpu.core_type<tc>, window_params = [{transform_indices = @transform_0, window_bounds = array<i64: 8, 32>}, {pipeline_mode = #tpu.pipeline_mode<synchronous>, transform_indices = @transform_1, window_bounds = array<i64: 32, 128>}, {pipeline_mode = #tpu.pipeline_mode<synchronous>, transform_indices = @transform_2, window_bounds = array<i64: 1, 128>}, {pipeline_mode = #tpu.pipeline_mode<synchronous>, transform_indices = @transform_3, window_bounds = array<i64: 128, 16>}, {pipeline_mode = #tpu.pipeline_mode<synchronous>, transform_indices = @transform_4, window_bounds = array<i64: 1, 16>}, {transform_indices = @transform_5, window_bounds = array<i64: 8, 16>}]} {
    %c0_i32 = arith.constant 0 : i32
    %0 = arith.cmpi eq, %arg1, %c0_i32 : i32
    %1 = arith.extui %0 : i1 to i32
    %c0_i32_0 = arith.constant 0 : i32
    %2 = arith.cmpi ne, %1, %c0_i32_0 : i32
    scf.if %2 {
      %cst_16 = arith.constant 0.000000e+00 : f32
      %21 = vector.broadcast %cst_16 : f32 to vector<8x16xf32>
      %c0_17 = arith.constant 0 : index
      %c0_18 = arith.constant 0 : index
      %22 = vector.load %arg8[%c0_17, %c0_18] : memref<8x16xf32, #tpu.memory_space<vmem>>, vector<8x16xf32>
      tpu.vector_store %arg8[%c0_17, %c0_18], %21 {strides = array<i32>} : memref<8x16xf32, #tpu.memory_space<vmem>>, vector<8x16xf32>,
    } else {
    }
    %c0 = arith.constant 0 : index
    %c0_1 = arith.constant 0 : index
    %3 = vector.load %arg2[%c0, %c0_1] : memref<8x32xf32, #tpu.memory_space<vmem>>, vector<8x32xf32>
    %4 = arith.truncf %3 : vector<8x32xf32> to vector<8x32xbf16>
    %c0_2 = arith.constant 0 : index
    %c0_3 = arith.constant 0 : index
    %5 = vector.load %arg3[%c0_2, %c0_3] : memref<32x128xbf16, #tpu.memory_space<vmem>>, vector<32x128xbf16>
    %cst = arith.constant dense<0.000000e+00> : vector<8x128xf32>
    %6 = tpu.matmul %4, %5, %cst {dimension_numbers = #tpu.dot_dimension_numbers<[1], [0], [0], [1], [0, 0, 1, 1], [], []>} : vector<8x32xbf16>, vector<32x128xbf16>, vector<8x128xf32> -> vector<8x128xf32>
    %c0_4 = arith.constant 0 : index
    %c0_5 = arith.constant 0 : index
    %7 = vector.load %arg4[%c0_4, %c0_5] : memref<1x128xf32, #tpu.memory_space<vmem>>, vector<1x128xf32>
    %8 = vector.broadcast %7 : vector<1x128xf32> to vector<8x128xf32>
    %9 = arith.addf %6, %8 : vector<8x128xf32>
    %cst_6 = arith.constant 0.000000e+00 : f32
    %10 = vector.broadcast %cst_6 : f32 to vector<8x128xf32>
    %11 = arith.maximumf %9, %10 : vector<8x128xf32>
    %c0_7 = arith.constant 0 : index
    %c0_8 = arith.constant 0 : index
    %12 = vector.load %arg8[%c0_7, %c0_8] : memref<8x16xf32, #tpu.memory_space<vmem>>, vector<8x16xf32>
    %13 = arith.truncf %11 : vector<8x128xf32> to vector<8x128xbf16>
    %c0_9 = arith.constant 0 : index
    %c0_10 = arith.constant 0 : index
    %14 = vector.load %arg5[%c0_9, %c0_10] : memref<128x16xbf16, #tpu.memory_space<vmem>>, vector<128x16xbf16>
    %cst_11 = arith.constant dense<0.000000e+00> : vector<8x16xf32>
    %15 = tpu.matmul %13, %14, %cst_11 {dimension_numbers = #tpu.dot_dimension_numbers<[1], [0], [0], [1], [0, 0, 1, 1], [], []>} : vector<8x128xbf16>, vector<128x16xbf16>, vector<8x16xf32> -> vector<8x16xf32>
    %16 = arith.addf %12, %15 : vector<8x16xf32>
    %c0_12 = arith.constant 0 : index
    %c0_13 = arith.constant 0 : index
    %17 = vector.load %arg8[%c0_12, %c0_13] : memref<8x16xf32, #tpu.memory_space<vmem>>, vector<8x16xf32>
    tpu.vector_store %arg8[%c0_12, %c0_13], %16 {strides = array<i32>} : memref<8x16xf32, #tpu.memory_space<vmem>>, vector<8x16xf32>,
    %c0_i32_14 = arith.constant 0 : i32
    %18 = arith.cmpi eq, %arg1, %c0_i32_14 : i32
    %19 = arith.extui %18 : i1 to i32
    %c0_i32_15 = arith.constant 0 : i32
    %20 = arith.cmpi ne, %19, %c0_i32_15 : i32
    scf.if %20 {
      %c0_16 = arith.constant 0 : index
      %c0_17 = arith.constant 0 : index
      %21 = vector.load %arg8[%c0_16, %c0_17] : memref<8x16xf32, #tpu.memory_space<vmem>>, vector<8x16xf32>
      %c0_18 = arith.constant 0 : index
      %c0_19 = arith.constant 0 : index
      %22 = vector.load %arg6[%c0_18, %c0_19] : memref<1x16xf32, #tpu.memory_space<vmem>>, vector<1x16xf32>
      %23 = vector.broadcast %22 : vector<1x16xf32> to vector<8x16xf32>
      %24 = arith.addf %21, %23 : vector<8x16xf32>
      %c0_20 = arith.constant 0 : index
      %c0_21 = arith.constant 0 : index
      %25 = vector.load %arg7[%c0_20, %c0_21] : memref<8x16xf32, #tpu.memory_space<vmem>>, vector<8x16xf32>
      tpu.vector_store %arg7[%c0_20, %c0_21], %24 {strides = array<i32>} : memref<8x16xf32, #tpu.memory_space<vmem>>, vector<8x16xf32>,
    } else {
    }
    return
  }
  func.func @transform_0(%arg0: i32, %arg1: i32) -> (i32, i32) {
    %c0_i32 = arith.constant 0 : i32
    %c0_i32_0 = arith.constant 0 : i32
    return %arg0, %c0_i32 : i32, i32
  }
  func.func @transform_1(%arg0: i32, %arg1: i32) -> (i32, i32) {
    %c0_i32 = arith.constant 0 : i32
    %c0_i32_0 = arith.constant 0 : i32
    return %c0_i32, %arg1 : i32, i32
  }
  func.func @transform_2(%arg0: i32, %arg1: i32) -> (i32, i32) {
    %c0_i32 = arith.constant 0 : i32
    %c0_i32_0 = arith.constant 0 : i32
    return %c0_i32, %arg1 : i32, i32
  }
  func.func @transform_3(%arg0: i32, %arg1: i32) -> (i32, i32) {
    %c0_i32 = arith.constant 0 : i32
    %c0_i32_0 = arith.constant 0 : i32
    return %arg1, %c0_i32 : i32, i32
  }
  func.func @transform_4(%arg0: i32, %arg1: i32) -> (i32, i32) {
    %c0_i32 = arith.constant 0 : i32
    %c0_i32_0 = arith.constant 0 : i32
    %c0_i32_1 = arith.constant 0 : i32
    return %c0_i32, %c0_i32_0 : i32, i32
  }
  func.func @transform_5(%arg0: i32, %arg1: i32) -> (i32, i32) {
    %c0_i32 = arith.constant 0 : i32
    %c0_i32_0 = arith.constant 0 : i32
    return %arg0, %c0_i32 : i32, i32
  }
}

</mosaic_0001>

<bundles_post_ra>
// kernel: tpu_custom_call.1
= control target key start
LH: loop header
LB: loop body
LE: loop exit
PB: predicated region body
PF: predicated region fallthrough
CT: control target
= control target key end

     0   :  { %v322_v1 = vmov 0.0   ;;  %vm323_vm0 = vmmov 0   ;;  %vm53_vm1 = vcmask 261120   ;;  %s400_s0 = inlined_call_operand.vmem [shape: f32[8,32], index: 0, kind: input, shape index: {}]   ;;  %s401_s1 = inlined_call_operand.vmem [shape: bf16[32,128], index: 1, kind: input, shape index: {}]   ;;  %s402_s2 = inlined_call_operand.vmem [shape: f32[1,128], index: 2, kind: input, shape index: {}]   ;;  %s403_s3 = inlined_call_operand.vmem [shape: bf16[128,16], index: 3, kind: input, shape index: {}]   ;;  %s404_s4 = inlined_call_operand.vmem [shape: f32[1,16], index: 4, kind: input, shape index: {}]   ;;  %s405_s5 = inlined_call_operand.hbm [shape: f32[8,16], index: 5, kind: output, shape index: {}]  }
   0x1   :  { %v290_v0 = vld [vmem:[%s401_s1 + $0x8] sm:$0xff]   ;;  %259 = vmatprep.subr.bf16.mxu0 %v322_v1  ;;  %v291_v2 = vld [vmem:[%s401_s1] sm:$0xff]   ;;  %267 = vmatprep.subr.bf16.mxu1 %v322_v1  ;;  %v292_v4 = vld [vmem:[%s403_s3 + $0x38] sm:$0xff]  }
   0x2   :  { %260 = vmatpush3.bf16.msra.mxu0 %v290_v0  ;;  %263 = vmatprep.mubr.msk.bf16.mxu0 %vm323_vm0, %v322_v1  ;;  %v28_v3 = vld [vmem:[%s400_s0] sm:$0xff]  ;;  %v293_v6 = vld [vmem:[%s403_s3 + $0x30] sm:$0xff]   ;;  %v294_v7 = vld [vmem:[%s403_s3 + $0x28] sm:$0xff]  }
   0x3   :  { %261 = vmatprep.subr.bf16.mxu0 %v322_v1  ;;  %283 = vmatprep.mubr.msk.bf16.mxu1 %vm323_vm0, %v322_v1  ;;  %v29_v5 = vpack.c.bf16 %v28_v3, %v28_v3 }
   0x4   :  { %268 = vmatpush3.bf16.msra.mxu1 %v292_v4 }
   0x5   :  { %269 = vmatprep.subr.bf16.mxu1 %v322_v1 }
   0x6   :  { %262 = vmatpush3.bf16.msra.mxu0 %v291_v2 }
   0x8   :  { %270 = vmatpush3.bf16.msra.mxu1 %v293_v6 }
   0x9   :  { %264 = vmatmul.mubr.msk.bf16.vlgmr.msra.gmra.mxu0 %vm53_vm1, %v29_v5  ;;  %271 = vmatprep.subr.bf16.mxu1 %v322_v1 }
   0xa   :  { %10 = vsyncpa [#allocation4], 0  ;;  %v295_v8 = vld [vmem:[%s403_s3 + $0x20] sm:$0xff]   ;;  %v296_v9 = vld [vmem:[%s403_s3 + $0x18] sm:$0xff]   ;;  %vm26_vm2 = vcmask 130048  }
   0xb   :  { %v297_v10 = vld [vmem:[%s403_s3 + $0x10] sm:$0xff]   ;;  %v298_v11 = vld [vmem:[%s403_s3 + $0x8] sm:$0xff]   ;;  %v299_v12 = vld [vmem:[%s403_s3] sm:$0xff]   ;;  %27 = vst.msk [vmem:[#allocation2] sm:$0xff] %vm26_vm2, %v322_v1 }
   0xc   :  { %272 = vmatpush3.bf16.msra.mxu1 %v294_v7  ;;  %v234_v13 = vld [vmem:[%s402_s2] ss:$0 sm:$0xff]  ;;  %s324_s2 = smov [#allocation3]  }
   0xd   :  { %273 = vmatprep.subr.bf16.mxu1 %v322_v1  ;;  %v246_v27 = vld [vmem:[%s404_s4] ss:$0 sm:$0xff]  ;;  %s226_s16 = sshll.u32 %s324_s2, 4  ;;  %s227_s16 = int_to_ptr.vmem [resolvable:$true] %s226_s16 }
   0xe   :  { %s300_s17 = scalar_lea.vmem %s227_s16, 128  ;;  %p305_p1 = scmp.lt.s32.totalorder %s227_s16, %s227_s16 }
   0xf   :  { %p301_p0 = scmp.ne.s32.totalorder %s227_s16, %s300_s17  ;;  %p306_p2 = scmp.lt.s32.totalorder %s300_s17, %s300_s17 }
  0x10   :  { %274 = vmatpush3.bf16.msra.mxu1 %v295_v8 }
  0x11   :  { %275 = vmatprep.subr.bf16.mxu1 %v322_v1  ;;  %p307_p3 = por %p306_p2, %p305_p1 }
  0x12   :  { %v98_v21 = vld [vmem:[#allocation2] sm:$0xff] }
  0x13   :  { %p308_p4 = pnand %p307_p3, %p301_p0 }
  0x14   :  { %276 = vmatpush3.bf16.msra.mxu1 %v296_v9 }
  0x15   :  { %277 = vmatprep.subr.bf16.mxu1 %v322_v1 }
  0x18   :  { %278 = vmatpush3.bf16.msra.mxu1 %v297_v10 }
  0x19   :  { %279 = vmatprep.subr.bf16.mxu1 %v322_v1 }
  0x1c   :  { %280 = vmatpush3.bf16.msra.mxu1 %v298_v11 }
  0x1d   :  { %281 = vmatprep.subr.bf16.mxu1 %v322_v1 }
  0x20   :  { %282 = vmatpush3.bf16.msra.mxu1 %v299_v12 }
  0xc9   :  { %v91_v14 = vpop.f32.mrf.mxu0 }
  0xca   :  { %v92_v15 = vadd.f32 %v234_v13, %v91_v14 }
  0xcb   :  { %v265_v16 = vpop.f32.mrf.mxu0 }
  0xcc   :  { %v97_v17 = vmax.f32 %v92_v15, 0.0 }
  0xcd   :  { %v94_v18 = vpop.f32.mrf.mxu0 }
  0xce   :  { %v99_v19 = vpack.c.bf16 %v97_v17, %v97_v17 }
  0xcf   :  { %v266_v20 = vpop.f32.mrf.mxu0 }
  0xd0   :  { %284 = vmatmul.mubr.bf16.vlgmr.msra.gmra.mxu1 %v99_v19 }
 0x190   :  { %v198_v22 = vpop.f32.mrf.mxu1 }
 0x191   :  { %v204_v23 = vadd.f32 %v198_v22, %v98_v21 }
 0x192   :  { %v285_v24 = vpop.f32.mrf.mxu1 }
 0x193   :  { %206 = vst.msk [vmem:[#allocation2] sm:$0xff] %vm26_vm2, %v204_v23 }
 0x194   :  { %v201_v25 = vpop.f32.mrf.mxu1 }
 0x196   :  { %v286_v26 = vpop.f32.mrf.mxu1 }
 0x19a   :  { %v210_v28 = vld [vmem:[#allocation2] sm:$0xff] }
 0x19b   :  { %v218_v29 = vadd.f32 %v246_v27, %v210_v28 }
 0x19d   :  { %219 = vst.msk [vmem:[#allocation3] sm:$0xff] %vm26_vm2, %v218_v29 }
 0x19e   :  { %311 = shalt.err (!%p308_p4)
}
 0x19f   :  { %229 = dma.vmem_to_hbm [thread:$0]  %s227_s16, 128, %s405_s5, [#allocation4]  }
 0x1a0   :  { %320 = dma.done.wait [#allocation4], 128  }
 0x1a1   :  { %321 = vsyncadd [#allocation4], 4294967168 }
 0x1a2   :  { %233 = vsyncpa [#allocation4], 1 }

</bundles_post_ra>
